<compile_context>
chip_gen: v5e
topology: v5e:2x2
jax: 0.10.0
libtpu: 0.0.40
codegen_flags: <defaults>
</compile_context>

<pallas_src>
import math

import jax
import jax.numpy as jnp
from jax.experimental import pallas as pl
from jax.experimental.pallas import tpu as pltpu

HIDDEN = 128   # hidden width of both inner layers
LANES = 128    # lane-padded output width (>= action_size)


def _round_up(n, m):
    return ((n + m - 1) // m) * m


def dqn_mlp_kernel(x_ref, w1_ref, w23_ref, b_ref, o_ref):
    """Fused 3-layer MLP on one (TM, state) activation tile.

    x_ref  : (TM, S_pad)        activation tile, f32
    w1_ref : (S_pad, 128)       resident weight (f32 or bf16)
    w23_ref: (2, 128, 128)      stacked resident W2 / W3 (W3 lane-padded)
    b_ref  : (3, 128)           packed biases (b3 lane-padded), f32
    o_ref  : (TM, 128)          lane-dense output tile (Q-values in cols 0..A-1)
    """
    wdt = w1_ref.dtype

    # Layer 1: Linear + ReLU   (Dropout = identity in eval mode)
    h = jnp.dot(x_ref[...].astype(wdt), w1_ref[...],
                preferred_element_type=jnp.float32)
    h = jnp.maximum(h + b_ref[0:1, :], 0.0)

    # Layer 2: Linear + ReLU   (Dropout = identity in eval mode)
    h = jnp.dot(h.astype(wdt), w23_ref[0],
                preferred_element_type=jnp.float32)
    h = jnp.maximum(h + b_ref[1:2, :], 0.0)

    # Layer 3: Linear (Q-value head, lane-padded to 128)
    out = jnp.dot(h.astype(wdt), w23_ref[1],
                  preferred_element_type=jnp.float32)
    o_ref[...] = (out + b_ref[2:3, :]).astype(o_ref.dtype)


def init_params(key, state_size, action_size, hidden=HIDDEN):
    """xavier_uniform weights, zero biases (matches _initialize_weights).

    Weights stored as (in, out) so the kernel computes x @ W directly
    (PyTorch stores (out, in) and does x @ W.T)."""
    def xavier(k, fan_in, fan_out):
        limit = math.sqrt(6.0 / (fan_in + fan_out))
        return jax.random.uniform(k, (fan_in, fan_out), jnp.float32, -limit, limit)

    k1, k2, k3 = jax.random.split(key, 3)
    return {
        "w1": xavier(k1, state_size, hidden),
        "b1": jnp.zeros((hidden,), jnp.float32),
        "w2": xavier(k2, hidden, hidden),
        "b2": jnp.zeros((hidden,), jnp.float32),
        "w3": xavier(k3, hidden, action_size),
        "b3": jnp.zeros((action_size,), jnp.float32),
    }


def pack_params(params, param_dtype=jnp.float32):
    """One-time (outside-kernel) padding/packing of the parameters.

    - w1 rows (K = state_size) zero-padded to a multiple of 8 sublanes.
    - w3 / b3 zero-padded to 128 lanes (lane-dense output, full MXU columns).
    - W2 and padded W3 stacked into one (2,128,128) buffer; biases packed
      into one (3,128) buffer -> fewer, larger DMAs.
    """
    state_size = params["w1"].shape[0]
    action_size = params["w3"].shape[1]
    s_pad = _round_up(state_size, 8)

    w1 = jnp.zeros((s_pad, HIDDEN), jnp.float32).at[:state_size].set(params["w1"])
    w3 = jnp.zeros((HIDDEN, LANES), jnp.float32).at[:, :action_size].set(params["w3"])
    w23 = jnp.stack([params["w2"], w3]).astype(param_dtype)

    b = jnp.zeros((3, LANES), jnp.float32)
    b = b.at[0, :].set(params["b1"])
    b = b.at[1, :].set(params["b2"])
    b = b.at[2, :action_size].set(params["b3"])

    return {
        "w1": w1.astype(param_dtype),
        "w23": w23,
        "b": b,
        "state_size": state_size,
        "action_size": action_size,
    }


def dqn_forward(x, packed, *, block_rows=256):
    """Fused DQNetwork forward. x: (batch, state_size) f32 -> (batch, action) f32."""
    w1, w23, b = packed["w1"], packed["w23"], packed["b"]
    action_size = packed["action_size"]
    s_pad = w1.shape[0]

    batch = x.shape[0]
    x = x.astype(jnp.float32)

    # Pad feature (K) dim to the weight's padded state size.
    if x.shape[1] != s_pad:
        x = jnp.pad(x, ((0, 0), (0, s_pad - x.shape[1])))

    # Batch tile: multiple of 8 sublanes, capped at block_rows; pad batch to it.
    tm = min(_round_up(block_rows, 8), _round_up(batch, 8))
    b_pad = _round_up(batch, tm)
    if b_pad != batch:
        x = jnp.pad(x, ((0, b_pad - batch), (0, 0)))

    grid = (b_pad // tm,)

    itemsize = jnp.dtype(w1.dtype).itemsize
    flops = 2 * b_pad * (s_pad * HIDDEN + HIDDEN * HIDDEN + HIDDEN * LANES)
    bytes_accessed = (x.size * 4 + (w1.size + w23.size) * itemsize
                      + b.size * 4 + b_pad * LANES * 4)

    out = pl.pallas_call(
        dqn_mlp_kernel,
        out_shape=jax.ShapeDtypeStruct((b_pad, LANES), jnp.float32),
        grid_spec=pltpu.PrefetchScalarGridSpec(
            num_scalar_prefetch=0,
            grid=grid,
            in_specs=[
                pl.BlockSpec((tm, s_pad), lambda i: (i, 0)),          # streamed x
                pl.BlockSpec((s_pad, HIDDEN), lambda i: (0, 0)),      # resident W1
                pl.BlockSpec((2, HIDDEN, LANES), lambda i: (0, 0, 0)),  # resident W2|W3
                pl.BlockSpec((3, LANES), lambda i: (0, 0)),           # resident biases
            ],
            out_specs=pl.BlockSpec((tm, LANES), lambda i: (i, 0)),    # streamed out
        ),
        compiler_params=pltpu.CompilerParams(
            dimension_semantics=("parallel",)),
        cost_estimate=pl.CostEstimate(
            flops=flops, transcendentals=0, bytes_accessed=bytes_accessed),
    )(x, w1, w23, b)

    return out[:batch, :action_size]


def reference_forward(x, p):
    h = jnp.maximum(x @ p["w1"] + p["b1"], 0.0)
    h = jnp.maximum(h @ p["w2"] + p["b2"], 0.0)
    return h @ p["w3"] + p["b3"]


if __name__ == "__main__":
    key = jax.random.PRNGKey(0)
    kx, kp = jax.random.split(key)

    batch, state_size, action_size = 2, 16, 4
    x = jax.random.normal(kx, (batch, state_size), jnp.float32)
    params = init_params(kp, state_size, action_size)
    ref = reference_forward(x, params)

    # f32 resident weights: exact-match path (all chips).
    out = dqn_forward(x, pack_params(params, jnp.float32))
    out = jax.block_until_ready(out)
    assert out.shape == (batch, action_size)
    assert jnp.allclose(out, ref, atol=1e-5, rtol=1e-5)

    # bf16 resident weights (native MXU dtype on v6e/v7x), f32 accumulation.
    out_bf16 = jax.block_until_ready(dqn_forward(x, pack_params(params, jnp.bfloat16)))
    assert out_bf16.shape == (batch, action_size)
    assert jnp.allclose(out_bf16, ref, atol=1e-1, rtol=1e-1)

    print("KERNEL_OK")
</pallas_src>

<mosaic_0001>
module attributes {stable_mosaic.version = 11 : i64} {
  func.func @dqn_mlp_kernel(%arg0: i32, %arg1: memref<8x16xf32, #tpu.memory_space<vmem>>, %arg2: memref<16x128xf32, #tpu.memory_space<vmem>>, %arg3: memref<2x128x128xf32, #tpu.memory_space<vmem>>, %arg4: memref<3x128xf32, #tpu.memory_space<vmem>>, %arg5: memref<8x128xf32, #tpu.memory_space<vmem>>) attributes {dimension_semantics = [#tpu.dimension_semantics<parallel>], iteration_bounds = array<i64: 1>, scalar_prefetch = 0 : i64, scratch_operands = 0 : i64, tpu.core_type = #tpu.core_type<tc>, window_params = [{transform_indices = @transform_0, window_bounds = array<i64: 8, 16>}, {pipeline_mode = #tpu.pipeline_mode<synchronous>, transform_indices = @transform_1, window_bounds = array<i64: 16, 128>}, {pipeline_mode = #tpu.pipeline_mode<synchronous>, transform_indices = @transform_2, window_bounds = array<i64: 2, 128, 128>}, {pipeline_mode = #tpu.pipeline_mode<synchronous>, transform_indices = @transform_3, window_bounds = array<i64: 3, 128>}, {transform_indices = @transform_4, window_bounds = array<i64: 8, 128>}]} {
    %c0 = arith.constant 0 : index
    %c0_0 = arith.constant 0 : index
    %0 = vector.load %arg1[%c0, %c0_0] : memref<8x16xf32, #tpu.memory_space<vmem>>, vector<8x16xf32>
    %c0_1 = arith.constant 0 : index
    %c0_2 = arith.constant 0 : index
    %1 = vector.load %arg2[%c0_1, %c0_2] : memref<16x128xf32, #tpu.memory_space<vmem>>, vector<16x128xf32>
    %cst = arith.constant dense<0.000000e+00> : vector<8x128xf32>
    %2 = tpu.matmul %0, %1, %cst {dimension_numbers = #tpu.dot_dimension_numbers<[1], [0], [0], [1], [0, 0, 1, 1], [], []>} : vector<8x16xf32>, vector<16x128xf32>, vector<8x128xf32> -> vector<8x128xf32>
    %c0_3 = arith.constant 0 : index
    %c0_4 = arith.constant 0 : index
    %3 = vector.load %arg4[%c0_3, %c0_4] : memref<3x128xf32, #tpu.memory_space<vmem>>, vector<1x128xf32>
    %4 = vector.broadcast %3 : vector<1x128xf32> to vector<8x128xf32>
    %5 = arith.addf %2, %4 : vector<8x128xf32>
    %cst_5 = arith.constant 0.000000e+00 : f32
    %6 = vector.broadcast %cst_5 : f32 to vector<8x128xf32>
    %7 = arith.maximumf %5, %6 : vector<8x128xf32>
    %c0_6 = arith.constant 0 : index
    %c0_7 = arith.constant 0 : index
    %c0_8 = arith.constant 0 : index
    %8 = vector.load %arg3[%c0_6, %c0_7, %c0_8] : memref<2x128x128xf32, #tpu.memory_space<vmem>>, vector<1x128x128xf32>
    %9 = vector.shape_cast %8 : vector<1x128x128xf32> to vector<128x128xf32>
    %cst_9 = arith.constant dense<0.000000e+00> : vector<8x128xf32>
    %10 = tpu.matmul %7, %9, %cst_9 {dimension_numbers = #tpu.dot_dimension_numbers<[1], [0], [0], [1], [0, 0, 1, 1], [], []>} : vector<8x128xf32>, vector<128x128xf32>, vector<8x128xf32> -> vector<8x128xf32>
    %c1 = arith.constant 1 : index
    %c0_10 = arith.constant 0 : index
    %11 = vector.load %arg4[%c1, %c0_10] : memref<3x128xf32, #tpu.memory_space<vmem>>, vector<1x128xf32>
    %12 = vector.broadcast %11 : vector<1x128xf32> to vector<8x128xf32>
    %13 = arith.addf %10, %12 : vector<8x128xf32>
    %cst_11 = arith.constant 0.000000e+00 : f32
    %14 = vector.broadcast %cst_11 : f32 to vector<8x128xf32>
    %15 = arith.maximumf %13, %14 : vector<8x128xf32>
    %c1_12 = arith.constant 1 : index
    %c0_13 = arith.constant 0 : index
    %c0_14 = arith.constant 0 : index
    %16 = vector.load %arg3[%c1_12, %c0_13, %c0_14] : memref<2x128x128xf32, #tpu.memory_space<vmem>>, vector<1x128x128xf32>
    %17 = vector.shape_cast %16 : vector<1x128x128xf32> to vector<128x128xf32>
    %cst_15 = arith.constant dense<0.000000e+00> : vector<8x128xf32>
    %18 = tpu.matmul %15, %17, %cst_15 {dimension_numbers = #tpu.dot_dimension_numbers<[1], [0], [0], [1], [0, 0, 1, 1], [], []>} : vector<8x128xf32>, vector<128x128xf32>, vector<8x128xf32> -> vector<8x128xf32>
    %c2 = arith.constant 2 : index
    %c0_16 = arith.constant 0 : index
    %19 = vector.load %arg4[%c2, %c0_16] : memref<3x128xf32, #tpu.memory_space<vmem>>, vector<1x128xf32>
    %20 = vector.broadcast %19 : vector<1x128xf32> to vector<8x128xf32>
    %21 = arith.addf %18, %20 : vector<8x128xf32>
    %c0_17 = arith.constant 0 : index
    %c0_18 = arith.constant 0 : index
    %22 = vector.load %arg5[%c0_17, %c0_18] : memref<8x128xf32, #tpu.memory_space<vmem>>, vector<8x128xf32>
    tpu.vector_store %arg5[%c0_17, %c0_18], %21 {strides = array<i32>} : memref<8x128xf32, #tpu.memory_space<vmem>>, vector<8x128xf32>,
    return
  }
  func.func @transform_0(%arg0: i32) -> (i32, i32) {
    %c0_i32 = arith.constant 0 : i32
    %c0_i32_0 = arith.constant 0 : i32
    return %arg0, %c0_i32 : i32, i32
  }
  func.func @transform_1(%arg0: i32) -> (i32, i32) {
    %c0_i32 = arith.constant 0 : i32
    %c0_i32_0 = arith.constant 0 : i32
    %c0_i32_1 = arith.constant 0 : i32
    return %c0_i32, %c0_i32_0 : i32, i32
  }
  func.func @transform_2(%arg0: i32) -> (i32, i32, i32) {
    %c0_i32 = arith.constant 0 : i32
    %c0_i32_0 = arith.constant 0 : i32
    %c0_i32_1 = arith.constant 0 : i32
    %c0_i32_2 = arith.constant 0 : i32
    return %c0_i32, %c0_i32_0, %c0_i32_1 : i32, i32, i32
  }
  func.func @transform_3(%arg0: i32) -> (i32, i32) {
    %c0_i32 = arith.constant 0 : i32
    %c0_i32_0 = arith.constant 0 : i32
    %c0_i32_1 = arith.constant 0 : i32
    return %c0_i32, %c0_i32_0 : i32, i32
  }
  func.func @transform_4(%arg0: i32) -> (i32, i32) {
    %c0_i32 = arith.constant 0 : i32
    %c0_i32_0 = arith.constant 0 : i32
    return %arg0, %c0_i32 : i32, i32
  }
}

</mosaic_0001>

<bundles_post_ra>
// kernel: tpu_custom_call.1
= control target key start
LH: loop header
LB: loop body
LE: loop exit
PB: predicated region body
PF: predicated region fallthrough
CT: control target
= control target key end

     0   :  { %9 = vsyncpa [#allocation3], 0  ;;  %s391_s0 = inlined_call_operand.hbm [shape: f32[8,16], index: 0, kind: input, shape index: {}]   ;;  %s392_s1 = inlined_call_operand.hbm [shape: f32[16,128], index: 1, kind: input, shape index: {}]   ;;  %s393_s2 = inlined_call_operand.hbm [shape: f32[2,128,128], index: 2, kind: input, shape index: {}]   ;;  %s394_s3 = inlined_call_operand.hbm [shape: f32[3,128], index: 3, kind: input, shape index: {}]   ;;  %s395_s4 = inlined_call_operand.hbm [shape: f32[8,128], index: 4, kind: output, shape index: {}]  }
   0x1   :  { %10 = vsyncpa [#allocation6], 0 }
   0x2   :  { %11 = vsyncpa [#allocation9], 0  ;;  %s28_s17 = sshll.u32 %s392_s1, 4  ;;  %s29_s17 = int_to_ptr.hbm [resolvable:$true] %s28_s17 }
   0x3   :  { %12 = vsyncpa [#allocation4], 0  ;;  %s344_s18 = smov [#allocation5]   ;;  %s18_s22 = sshll.u32 %s391_s0, 4  ;;  %s19_s22 = int_to_ptr.hbm [resolvable:$true] %s18_s22 }
   0x4   :  { %s30_s19 = sshll.u32 %s344_s18, 4  ;;  %s345_s23 = smov 128   ;;  %s31_s19 = int_to_ptr.vmem [resolvable:$true] %s30_s19 }
   0x5   :  { %s346_s24 = smov 8   ;;  %s347_s25 = smov [#allocation2]  }
   0x6   :  { %36 = dma.hbm_to_vmem [thread:$0]  %s29_s17, 256, %s31_s19, [#allocation6], %s345_s23, %s345_s23, %s346_s24  }
   0x7   :  { %s20_s26 = sshll.u32 %s347_s25, 4  ;;  %s41_s29 = sshll.u32 %s393_s2, 4  ;;  %s21_s26 = int_to_ptr.vmem [resolvable:$true] %s20_s26  ;;  %s42_s29 = int_to_ptr.hbm [resolvable:$true] %s41_s29 }
   0x8   :  { %23 = dma.hbm_to_vmem [thread:$0]  %s19_s22, 128, %s21_s26, [#allocation3]  }
   0x9   :  { %s55_s5 = sshll.u32 %s394_s3, 4  ;;  %s348_s6 = smov [#allocation7]   ;;  %s56_s5 = int_to_ptr.hbm [resolvable:$true] %s55_s5 }
   0xa   :  { %s43_s7 = sshll.u32 %s348_s6, 4  ;;  %s349_s0 = smov [#allocation8]   ;;  %s44_s7 = int_to_ptr.vmem [resolvable:$true] %s43_s7 }
   0xb   :  { %49 = dma.hbm_to_vmem [thread:$0]  %s42_s29, 4096, %s44_s7, [#allocation6], %s345_s23, %s345_s23, %s346_s24  }
   0xc   :  { %s57_s8 = sshll.u32 %s349_s0, 4  ;;  %s58_s8 = int_to_ptr.vmem [resolvable:$true] %s57_s8 }
   0xd   :  { %60 = dma.hbm_to_vmem [thread:$0]  %s56_s5, 64, %s58_s8, [#allocation9]  }
   0xe   :  { %336 = dma.done.wait [#allocation3], 128  }
   0xf   :  { %337 = vsyncadd [#allocation3], 4294967168 }
  0x10   :  { %338 = dma.done.wait [#allocation6], 4352  }
  0x11   :  { %339 = vsyncadd [#allocation6], 4294962944 }
  0x12   :  { %340 = dma.done.wait [#allocation9], 64  }
  0x13   :  { %341 = vsyncadd [#allocation9], 4294967232  ;;  %v79_v0 = vld [vmem:[#allocation5 + $0x8] sm:$0xff]  ;;  %v78_v1 = vld [vmem:[#allocation5] sm:$0xff]  ;;  %vm82_vm0 = vcmask 130048   ;;  %s350_s2 = smov [#allocation10]  }
  0x14   :  { %100 = vmatpush.msra.mxu0 %v79_v0  ;;  %v77_v2 = vld [vmem:[#allocation2] sm:$0xff]  ;;  %v122_v3 = vld [vmem:[#allocation7 + $0x78] sm:$0xff]  ;;  %v121_v4 = vld [vmem:[#allocation7 + $0x70] sm:$0xff]  ;;  %s191_s3 = sshll.u32 %s350_s2, 4  ;;  %s193_s11 = sshll.u32 %s395_s4, 4  ;;  %s192_s3 = int_to_ptr.vmem [resolvable:$true] %s191_s3  ;;  %s194_s11 = int_to_ptr.hbm [resolvable:$true] %s193_s11 }
  0x15   :  { %125 = vmatpush.msra.mxu1 %v122_v3  ;;  %v120_v5 = vld [vmem:[#allocation7 + $0x68] sm:$0xff]  ;;  %v119_v6 = vld [vmem:[#allocation7 + $0x60] sm:$0xff]  ;;  %v118_v7 = vld [vmem:[#allocation7 + $0x58] sm:$0xff] }
  0x16   :  { %101 = vmatpush.msra.mxu0 %v78_v1  ;;  %v117_v8 = vld [vmem:[#allocation7 + $0x50] sm:$0xff]  ;;  %v116_v9 = vld [vmem:[#allocation7 + $0x48] sm:$0xff]  ;;  %v115_v10 = vld [vmem:[#allocation7 + $0x40] sm:$0xff] }
  0x17   :  { %205 = vmatmul.msk.f32.vlgmr.msra.gmra.mxu0 %vm82_vm0, %v77_v2  ;;  %126 = vmatpush.msra.mxu1 %v121_v4  ;;  %v114_v11 = vld [vmem:[#allocation7 + $0x38] sm:$0xff]  ;;  %v113_v12 = vld [vmem:[#allocation7 + $0x30] sm:$0xff]  ;;  %v112_v13 = vld [vmem:[#allocation7 + $0x28] sm:$0xff] }
  0x18   :  { %v111_v14 = vld [vmem:[#allocation7 + $0x20] sm:$0xff]  ;;  %v110_v15 = vld [vmem:[#allocation7 + $0x18] sm:$0xff]  ;;  %v109_v16 = vld [vmem:[#allocation7 + $0x10] sm:$0xff] }
  0x19   :  { %127 = vmatpush.msra.mxu1 %v120_v5  ;;  %v108_v17 = vld [vmem:[#allocation7 + $0x8] sm:$0xff]  ;;  %v107_v18 = vld [vmem:[#allocation7] sm:$0xff]  ;;  %v162_v19 = vld [vmem:[#allocation7 + $0xf8] sm:$0xff] }
  0x1a   :  { %v161_v20 = vld [vmem:[#allocation7 + $0xf0] sm:$0xff]  ;;  %165 = vmatpush.msra.mxu2 %v162_v19  ;;  %v160_v21 = vld [vmem:[#allocation7 + $0xe8] sm:$0xff]  ;;  %v159_v22 = vld [vmem:[#allocation7 + $0xe0] sm:$0xff] }
  0x1b   :  { %128 = vmatpush.msra.mxu1 %v119_v6  ;;  %v158_v23 = vld [vmem:[#allocation7 + $0xd8] sm:$0xff]  ;;  %v157_v24 = vld [vmem:[#allocation7 + $0xd0] sm:$0xff]  ;;  %v156_v25 = vld [vmem:[#allocation7 + $0xc8] sm:$0xff] }
  0x1c   :  { %166 = vmatpush.msra.mxu2 %v161_v20  ;;  %v155_v26 = vld [vmem:[#allocation7 + $0xc0] sm:$0xff]  ;;  %v154_v27 = vld [vmem:[#allocation7 + $0xb8] sm:$0xff]  ;;  %v153_v28 = vld [vmem:[#allocation7 + $0xb0] sm:$0xff] }
  0x1d   :  { %129 = vmatpush.msra.mxu1 %v118_v7  ;;  %v152_v29 = vld [vmem:[#allocation7 + $0xa8] sm:$0xff]  ;;  %v151_v30 = vld [vmem:[#allocation7 + $0xa0] sm:$0xff]  ;;  %v150_v31 = vld [vmem:[#allocation7 + $0x98] sm:$0xff] }
  0x1e   :  { %167 = vmatpush.msra.mxu2 %v160_v21  ;;  %v213_v32 = vld [vmem:[#allocation8] ss:$0 sm:$0xff]  ;;  %v149_v36 = vld [vmem:[#allocation7 + $0x90] sm:$0xff]  ;;  %v148_v37 = vld [vmem:[#allocation7 + $0x88] sm:$0xff] }
  0x1f   :  { %130 = vmatpush.msra.mxu1 %v117_v8  ;;  %v147_v38 = vld [vmem:[#allocation7 + $0x80] sm:$0xff] }
  0x20   :  { %168 = vmatpush.msra.mxu2 %v159_v22  ;;  %v214_v39 = vld [vmem:[#allocation8 + $0x1] ss:$0 sm:$0xff]  ;;  %v215_v43 = vld [vmem:[#allocation8 + $0x2] ss:$0 sm:$0xff] }
  0x21   :  { %131 = vmatpush.msra.mxu1 %v116_v9 }
  0x22   :  { %169 = vmatpush.msra.mxu2 %v158_v23 }
  0x23   :  { %132 = vmatpush.msra.mxu1 %v115_v10 }
  0x24   :  { %170 = vmatpush.msra.mxu2 %v157_v24 }
  0x25   :  { %133 = vmatpush.msra.mxu1 %v114_v11 }
  0x26   :  { %171 = vmatpush.msra.mxu2 %v156_v25 }
  0x27   :  { %134 = vmatpush.msra.mxu1 %v113_v12 }
  0x28   :  { %172 = vmatpush.msra.mxu2 %v155_v26 }
  0x29   :  { %135 = vmatpush.msra.mxu1 %v112_v13 }
  0x2a   :  { %173 = vmatpush.msra.mxu2 %v154_v27 }
  0x2b   :  { %136 = vmatpush.msra.mxu1 %v111_v14 }
  0x2c   :  { %174 = vmatpush.msra.mxu2 %v153_v28 }
  0x2d   :  { %137 = vmatpush.msra.mxu1 %v110_v15 }
  0x2e   :  { %175 = vmatpush.msra.mxu2 %v152_v29 }
  0x2f   :  { %138 = vmatpush.msra.mxu1 %v109_v16 }
  0x30   :  { %176 = vmatpush.msra.mxu2 %v151_v30 }
  0x31   :  { %139 = vmatpush.msra.mxu1 %v108_v17 }
  0x32   :  { %177 = vmatpush.msra.mxu2 %v150_v31 }
  0x33   :  { %140 = vmatpush.msra.mxu1 %v107_v18 }
  0x34   :  { %178 = vmatpush.msra.mxu2 %v149_v36 }
  0x36   :  { %179 = vmatpush.msra.mxu2 %v148_v37 }
  0x38   :  { %180 = vmatpush.msra.mxu2 %v147_v38 }
  0x94   :  { %v103_v33 = vpop.f32.mrf.mxu0 }
  0x95   :  { %v104_v34 = vadd.f32 %v213_v32, %v103_v33 }
  0x97   :  { %v106_v35 = vmax.f32 %v104_v34, 0.0 }
  0x99   :  { %141 = vmatmul.f32.vlgmr.msra.gmra.mxu1 %v106_v35 }
 0x116   :  { %v142_v40 = vpop.f32.mrf.mxu1 }
 0x117   :  { %v143_v41 = vadd.f32 %v214_v39, %v142_v40 }
 0x119   :  { %v145_v42 = vmax.f32 %v143_v41, 0.0 }
 0x11b   :  { %181 = vmatmul.f32.vlgmr.msra.gmra.mxu2 %v145_v42 }
 0x19e   :  { %v182_v44 = vpop.f32.mrf.mxu2 }
 0x19f   :  { %v183_v45 = vadd.f32 %v215_v43, %v182_v44 }
 0x1a1   :  { %185 = vst [vmem:[#allocation10] sm:$0xff] %v183_v45 }
 0x1a2   :  { %196 = dma.vmem_to_hbm [thread:$0]  %s192_s3, 128, %s194_s11, [#allocation4]  }
 0x1a3   :  { %342 = dma.done.wait [#allocation4], 128  }
 0x1a4   :  { %343 = vsyncadd [#allocation4], 4294967168 }
 0x1a5   :  { %201 = vsyncpa [#allocation3], 1 }
 0x1a6   :  { %202 = vsyncpa [#allocation6], 1 }
 0x1a7   :  { %203 = vsyncpa [#allocation9], 1 }
 0x1a8   :  { %204 = vsyncpa [#allocation4], 1 }

</bundles_post_ra>
